<compile_context>
chip_gen: v7x
topology: tpu7x:2x2x1
jax: 0.10.0
libtpu: 0.0.40
codegen_flags: <defaults>
</compile_context>

<pallas_src>
import jax
import jax.numpy as jnp
from jax import lax
from jax.experimental import pallas as pl
from jax.experimental.pallas import tpu as pltpu

KH = KW = 4
STRIDE = 2
PAD = 1
CIN = 3
COUT = 64
K = CIN * KH * KW  # 48

_LANE = 128
_TM_MIN = 512
_TM_MAX = 2048


def _round_up(x, m):
    return ((x + m - 1) // m) * m


def _choose_s_tiling(s):
    """Pick lane-dim tile TM and padded spatial extent S_pad (S_pad % TM == 0)."""
    if s <= _TM_MAX:
        # Single tile along the spatial axis; block == full dim is always legal.
        return s, s
    s_pad = _round_up(s, _LANE)
    n = s_pad // _LANE
    best = None
    for d in range(1, n + 1):
        cand = d * _LANE
        if n % d == 0 and _TM_MIN <= cand <= _TM_MAX:
            best = cand
    if best is not None:
        return best, s_pad
    # No nice divisor: use the max tile and pad spatial up to a multiple of it.
    return _TM_MAX, _round_up(s, _TM_MAX)


def _conv_matmul_relu_kernel(w_ref, b_ref, p_ref, o_ref):
    # w_ref: (COUT, K)   resident weights
    # b_ref: (COUT, 1)   resident bias
    # p_ref: (1, K, TM)  streamed patch tile (spatial on lanes)
    # o_ref: (1, COUT, TM) streamed output tile
    acc = jnp.dot(w_ref[...], p_ref[0], preferred_element_type=jnp.float32)
    acc = acc + b_ref[...]                       # broadcast bias over lanes
    o_ref[0] = jnp.maximum(acc, 0.0).astype(o_ref.dtype)


def discriminator_forward(x, weight, bias):
    """x: (N, 3, H, W) f32 NCHW; weight: (64, 3, 4, 4); bias: (64,). Returns NCHW."""
    N, C, H, W = x.shape
    assert C == CIN
    Ho = (H + 2 * PAD - KH) // STRIDE + 1
    Wo = (W + 2 * PAD - KW) // STRIDE + 1
    S = Ho * Wo

    # im2col as one fused XLA relayout: (N, K, Ho, Wo), K ordered (c, kh, kw)
    # which matches weight.reshape(COUT, C*KH*KW) ordering.
    patches = lax.conv_general_dilated_patches(
        x, filter_shape=(KH, KW), window_strides=(STRIDE, STRIDE),
        padding=((PAD, PAD), (PAD, PAD)))
    patches = patches.reshape(N, K, S)           # contiguous reshape, no copy

    TM, S_pad = _choose_s_tiling(S)
    if S_pad != S:
        patches = jnp.pad(patches, ((0, 0), (0, 0), (0, S_pad - S)))

    w_mat = weight.reshape(COUT, K).astype(jnp.float32)
    b_mat = bias.reshape(COUT, 1).astype(jnp.float32)

    out = pl.pallas_call(
        _conv_matmul_relu_kernel,
        out_shape=jax.ShapeDtypeStruct((N, COUT, S_pad), jnp.float32),
        grid_spec=pltpu.PrefetchScalarGridSpec(
            num_scalar_prefetch=0,
            grid=(N, S_pad // TM),
            in_specs=[
                pl.BlockSpec((COUT, K), lambda n, s: (0, 0)),     # resident W
                pl.BlockSpec((COUT, 1), lambda n, s: (0, 0)),     # resident bias
                pl.BlockSpec((1, K, TM), lambda n, s: (n, 0, s)),  # patch tile
            ],
            out_specs=pl.BlockSpec((1, COUT, TM), lambda n, s: (n, 0, s)),
        ),
        compiler_params=pltpu.CompilerParams(
            dimension_semantics=("parallel", "parallel")),
    )(w_mat, b_mat, patches)

    # (N, COUT, S_pad) -> (N, COUT, Ho, Wo): already channels-first, no transpose.
    return out[:, :, :S].reshape(N, COUT, Ho, Wo)


def _reference(x, weight, bias):
    out = lax.conv_general_dilated(
        x, weight, window_strides=(STRIDE, STRIDE),
        padding=((PAD, PAD), (PAD, PAD)),
        dimension_numbers=("NCHW", "OIHW", "NCHW"))
    out = out + bias.reshape(1, COUT, 1, 1)
    return jnp.maximum(out, 0.0)


if __name__ == "__main__":
    key = jax.random.PRNGKey(0)
    kx, kw_, kb = jax.random.split(key, 3)

    # Small shapes consistent with the module: batch=2, 3 channels, 16x16 spatial.
    x = jax.random.normal(kx, (2, CIN, 16, 16), dtype=jnp.float32)

    fan_in = CIN * KH * KW
    limit = float(1.0 / (fan_in ** 0.5))
    weight = jax.random.uniform(kw_, (COUT, CIN, KH, KW),
                                minval=-limit, maxval=limit, dtype=jnp.float32)
    bias = jax.random.uniform(kb, (COUT,),
                              minval=-limit, maxval=limit, dtype=jnp.float32)

    fwd = jax.jit(discriminator_forward)
    out = jax.block_until_ready(fwd(x, weight, bias))

    ref = _reference(x, weight, bias)
    assert out.shape == (2, COUT, 8, 8)
    assert jnp.allclose(out, ref, atol=1e-4, rtol=1e-4)

    print("KERNEL_OK")
</pallas_src>

<mosaic_0001>
module attributes {stable_mosaic.version = 11 : i64} {
  func.func @_conv_matmul_relu_kernel(%arg0: i32, %arg1: i32, %arg2: memref<64x48xf32, #tpu.memory_space<vmem>>, %arg3: memref<64x1xf32, #tpu.memory_space<vmem>>, %arg4: memref<1x48x64xf32, #tpu.memory_space<vmem>>, %arg5: memref<1x64x64xf32, #tpu.memory_space<vmem>>) attributes {dimension_semantics = [#tpu.dimension_semantics<parallel>, #tpu.dimension_semantics<parallel>], iteration_bounds = array<i64: 2, 1>, scalar_prefetch = 0 : i64, scratch_operands = 0 : i64, tpu.core_type = #tpu.core_type<tc>, window_params = [{pipeline_mode = #tpu.pipeline_mode<synchronous>, transform_indices = @transform_0, window_bounds = array<i64: 64, 48>}, {pipeline_mode = #tpu.pipeline_mode<synchronous>, transform_indices = @transform_1, window_bounds = array<i64: 64, 1>}, {transform_indices = @transform_2, window_bounds = array<i64: 1, 48, 64>}, {transform_indices = @transform_3, window_bounds = array<i64: 1, 64, 64>}]} {
    %c0 = arith.constant 0 : index
    %c0_0 = arith.constant 0 : index
    %0 = vector.load %arg2[%c0, %c0_0] : memref<64x48xf32, #tpu.memory_space<vmem>>, vector<64x48xf32>
    %c0_1 = arith.constant 0 : index
    %c0_2 = arith.constant 0 : index
    %c0_3 = arith.constant 0 : index
    %1 = vector.load %arg4[%c0_1, %c0_2, %c0_3] : memref<1x48x64xf32, #tpu.memory_space<vmem>>, vector<1x48x64xf32>
    %2 = vector.shape_cast %1 : vector<1x48x64xf32> to vector<48x64xf32>
    %cst = arith.constant dense<0.000000e+00> : vector<64x64xf32>
    %3 = tpu.matmul %0, %2, %cst {dimension_numbers = #tpu.dot_dimension_numbers<[1], [0], [0], [1], [0, 0, 1, 1], [], []>} : vector<64x48xf32>, vector<48x64xf32>, vector<64x64xf32> -> vector<64x64xf32>
    %c0_4 = arith.constant 0 : index
    %c0_5 = arith.constant 0 : index
    %4 = vector.load %arg3[%c0_4, %c0_5] : memref<64x1xf32, #tpu.memory_space<vmem>>, vector<64x1xf32>
    %5 = vector.broadcast %4 : vector<64x1xf32> to vector<64x64xf32>
    %6 = arith.addf %3, %5 : vector<64x64xf32>
    %cst_6 = arith.constant 0.000000e+00 : f32
    %7 = vector.broadcast %cst_6 : f32 to vector<64x64xf32>
    %8 = arith.maximumf %6, %7 : vector<64x64xf32>
    %c0_7 = arith.constant 0 : index
    %c0_8 = arith.constant 0 : index
    %c0_9 = arith.constant 0 : index
    %9 = vector.load %arg5[%c0_7, %c0_8, %c0_9] : memref<1x64x64xf32, #tpu.memory_space<vmem>>, vector<1x64x64xf32>
    %10 = vector.shape_cast %9 : vector<1x64x64xf32> to vector<64x64xf32>
    %11 = vector.shape_cast %8 : vector<64x64xf32> to vector<1x64x64xf32>
    tpu.vector_store %arg5[%c0_7, %c0_8, %c0_9], %11 {strides = array<i32>} : memref<1x64x64xf32, #tpu.memory_space<vmem>>, vector<1x64x64xf32>,
    return
  }
  func.func @transform_0(%arg0: i32, %arg1: i32) -> (i32, i32) {
    %c0_i32 = arith.constant 0 : i32
    %c0_i32_0 = arith.constant 0 : i32
    %c0_i32_1 = arith.constant 0 : i32
    return %c0_i32, %c0_i32_0 : i32, i32
  }
  func.func @transform_1(%arg0: i32, %arg1: i32) -> (i32, i32) {
    %c0_i32 = arith.constant 0 : i32
    %c0_i32_0 = arith.constant 0 : i32
    %c0_i32_1 = arith.constant 0 : i32
    return %c0_i32, %c0_i32_0 : i32, i32
  }
  func.func @transform_2(%arg0: i32, %arg1: i32) -> (i32, i32, i32) {
    %c0_i32 = arith.constant 0 : i32
    %c0_i32_0 = arith.constant 0 : i32
    return %arg0, %c0_i32, %arg1 : i32, i32, i32
  }
  func.func @transform_3(%arg0: i32, %arg1: i32) -> (i32, i32, i32) {
    %c0_i32 = arith.constant 0 : i32
    %c0_i32_0 = arith.constant 0 : i32
    return %arg0, %c0_i32, %arg1 : i32, i32, i32
  }
}

</mosaic_0001>

<bundles_post_ra>
// kernel: discriminator_forward.1
= control target key start
LH: loop header
LB: loop body
LE: loop exit
PB: predicated region body
PF: predicated region fallthrough
CT: control target
= control target key end

     0   :  { %s642_s12 = smov 0   ;;  %s644_s13 = smov 0   ;;  %s743_s0 = inlined_call_operand.vmem [shape: f32[64,48], index: 0, kind: input, shape index: {}]   ;;  %s744_s1 = inlined_call_operand.vmem [shape: f32[64,1], index: 1, kind: input, shape index: {}]   ;;  %s745_s2 = inlined_call_operand.vmem [shape: f32[2,48,64], index: 2, kind: input, shape index: {}]   ;;  %s746_s3 = inlined_call_operand.vmem [shape: f32[2,64,64], index: 3, kind: output, shape index: {}]  }
   0x1   :  { %s646_s14 = smov 0  }
   0x2 LB: > { %s25_s15 = sadd.s32 1, %s615_s13  ;;  %p498_p0 = scmp.ge.s32.totalorder %s619_s14, 1  ;;  %s619_s14 = sphi %s646_s14, %s13_s14   ;;  %s615_s13 = sphi %s644_s13, %s748_s13   ;;  %s611_s12 = sphi %s642_s12, %s747_s12  }
   0x3   : > { %p27_p1 = scmp.ge.s32.totalorder %s25_s15, 2  ;;  %p156_p2 = scmp.lt.s32.totalorder %s619_s14, 3 }
   0x5   : > { %s750_s15 = smov (%p27_p1, %s25_s15), 0  ;;  %p157_p3 = pnand %p498_p0, %p156_p2 }
   0x6   : > { %p186_p4 = scmp.lt.s32.totalorder (!%p157_p3), %s611_s12, 1  ;;  %v202_v0 = vld [vmem:[%s743_s0] sm:$0xff] (!%p157_p3)  ;;  %vm264_vm0 = vcmask (!%p157_p3), 392192   ;;  %v621_v2 = vmov (!%p157_p3), 0   ;;  %v218_v3 = vld [vmem:[%s744_s1 + $0x10] sm:$0xff] (!%p157_p3)  ;;  %v219_v5 = vld [vmem:[%s744_s1 + $0x18] sm:$0xff] (!%p157_p3) }
   0x7   : > { %160 = sbr.rel (%p157_p3) target bundleno = 255 (0xff), region = 32  ;;  %v206_v1 = vld [vmem:[%s743_s0 + $0x20] sm:$0xff] (!%p157_p3)  ;;  %539 = vmatprep.mubr.msk.f32.mxu0 (!%p157_p3), %vm264_vm0, %v202_v0  ;;  %596 = vset.pattern.permute.xlu1 (!%p157_p3), %v621_v2  ;;  %v217_v6 = vld [vmem:[%s744_s1 + $0x8] sm:$0xff] (!%p157_p3)  ;;  %v223_v18 = vld [vmem:[%s744_s1 + $0x38] sm:$0xff] (!%p157_p3)  ;;  %vm402_vm1 = vcmask (!%p157_p3), 523264  }
   0x8   : > { %545 = vmatprep.mubr.msk.f32.mxu1 (!%p157_p3), %vm264_vm0, %v206_v1  ;;  %595 = vset.pattern.permute.xlu0 (!%p157_p3), %v621_v2  ;;  %v216_v4 = vld [vmem:[%s744_s1] sm:$0xff] (!%p157_p3)  ;;  %v221_v15 = vld [vmem:[%s744_s1 + $0x28] sm:$0xff] (!%p157_p3)  ;;  %v222_v19 = vld [vmem:[%s744_s1 + $0x30] sm:$0xff] (!%p157_p3) }
   0x9   : > { %236 = vperm.xlu1 (!%p157_p3), %596, %v218_v3   ;;  %226 = vperm.xlu0 (!%p157_p3), %595, %v216_v4   ;;  %v220_v16 = vld [vmem:[%s744_s1 + $0x20] sm:$0xff] (!%p157_p3)  ;;  %v203_v20 = vld [vmem:[%s743_s0 + $0x8] sm:$0xff] (!%p157_p3)  ;;  %v204_v22 = vld [vmem:[%s743_s0 + $0x10] sm:$0xff] (!%p157_p3) }
   0xa   : > { %v207_v21 = vld [vmem:[%s743_s0 + $0x28] sm:$0xff] (!%p157_p3)  ;;  %v208_v23 = vld [vmem:[%s743_s0 + $0x30] sm:$0xff] (!%p157_p3)  ;;  %v205_v24 = vld [vmem:[%s743_s0 + $0x18] sm:$0xff] (!%p157_p3) }
   0xb   : > { %v209_v25 = vld [vmem:[%s743_s0 + $0x38] sm:$0xff] (!%p157_p3) }
   0xd   : > { %241 = vperm.xlu1 (!%p157_p3), %596, %v219_v5   ;;  %231 = vperm.xlu0 (!%p157_p3), %595, %v217_v6  }
   0xe   : > { %s752_s12 = smov (!%p186_p4, %s611_s12), 1 }
   0xf   : > { %s569_s24 = smul.u32 48, %s752_s12  ;;  %s512_s29 = sshll.u32 %s752_s12, 6 }
  0x10   : > { %s201_s5 = scalar_lea.vmem %s746_s3, %s512_s29 }
  0x11   : > { %s193_s4 = scalar_lea.vmem %s745_s2, %s569_s24  ;;  %251 = vperm.xlu1 %596, %v221_v15   ;;  %246 = vperm.xlu0 %595, %v220_v16  }
  0x12   : > { %v210_v7 = vld [vmem:[%s193_s4] sm:$0xff]  ;;  %v211_v8 = vld [vmem:[%s193_s4 + $0x8] sm:$0xff]  ;;  %v212_v9 = vld [vmem:[%s193_s4 + $0x10] sm:$0xff] }
  0x13   : > { %v551_v10 = vpack.c.bf16 %v211_v8, %v210_v7  ;;  %v213_v11 = vld [vmem:[%s193_s4 + $0x18] sm:$0xff]  ;;  %v214_v13 = vld [vmem:[%s193_s4 + $0x20] sm:$0xff]  ;;  %v215_v14 = vld [vmem:[%s193_s4 + $0x28] sm:$0xff] }
  0x14   : > { %v555_v12 = vpack.c.bf16 %v213_v11, %v212_v9  ;;  %v559_v17 = vpack.c.bf16 %v215_v14, %v214_v13 }
  0x15   : > { %552 = vmatprep.subr.bf16.mxu0 %v551_v10  ;;  %563 = vmatprep.subr.bf16.mxu1 %v551_v10 }
  0x16   : > { %554 = vmatpush3.bf16.msra.mxu0 %v551_v10  ;;  %566 = vmatpush3.bf16.msra.mxu1 %v551_v10 }
  0x17   : > { %556 = vmatprep.subr.bf16.mxu0 %v555_v12  ;;  %564 = vmatprep.subr.bf16.mxu1 %v555_v12 }
  0x18   : > { %261 = vperm.xlu1 %596, %v223_v18   ;;  %256 = vperm.xlu0 %595, %v222_v19  }
  0x1a   : > { %558 = vmatpush3.bf16.msra.mxu0 %v555_v12  ;;  %567 = vmatpush3.bf16.msra.mxu1 %v555_v12 }
  0x1b   : > { %560 = vmatprep.subr.bf16.mxu0 %v559_v17  ;;  %565 = vmatprep.subr.bf16.mxu1 %v559_v17 }
  0x1e   : > { %562 = vmatpush3.bf16.msra.mxu0 %v559_v17  ;;  %568 = vmatpush3.bf16.msra.mxu1 %v559_v17 }
  0x21   : > { %540 = vmatmul.mubr.msk.f32.vlgmr.msra.gmra.mrb[0].mxu0 %vm264_vm0, %v203_v20  ;;  %546 = vmatmul.mubr.msk.f32.vlgmr.msra.gmra.mrb[0].mxu1 %vm264_vm0, %v207_v21 }
  0x22   : > { %542 = vmatprep.mubr.msk.f32.mxu0 %vm264_vm0, %v204_v22  ;;  %548 = vmatprep.mubr.msk.f32.mxu1 %vm264_vm0, %v208_v23 }
  0x25   : > { %543 = vmatmul.mubr.msk.f32.gmra.mrb[2].mxu0 %vm264_vm0, %v205_v24  ;;  %549 = vmatmul.mubr.msk.f32.gmra.mrb[2].mxu1 %vm264_vm0, %v209_v25 }
  0x88   : > { %v237_v26 = vpop.permute.xlu1 %236  ;;  %v227_v27 = vpop.permute.xlu0 %226 }
  0x8c   : > { %v242_v28 = vpop.permute.xlu1 %241  ;;  %v232_v29 = vpop.permute.xlu0 %231 }
  0x90   : > { %v252_v30 = vpop.permute.xlu1 %251  ;;  %v247_v31 = vpop.permute.xlu0 %246 }
  0x97   : > { %v262_v40 = vpop.permute.xlu1 %261  ;;  %v257_v41 = vpop.permute.xlu0 %256 }
  0xf4   : > { %v541_v32 = vpop.f32.mrb[0].mxu0  ;;  %v547_v33 = vpop.f32.mrb[0].mxu1 }
  0xf5   : > { %v361_v34 = vadd.f32 %v541_v32, %v232_v29  ;;  %v381_v35 = vadd.f32 %v547_v33, %v252_v30  ;;  %v355_v36 = vpop.f32.mrb[1].mxu0  ;;  %v375_v37 = vpop.f32.mrb[1].mxu1 }
  0xf6   : > { %v356_v38 = vadd.f32 %v355_v36, %v227_v27  ;;  %v376_v39 = vadd.f32 %v375_v37, %v247_v31 }
  0xf7   : > { %v395_v42 = vmax.f32 %v361_v34, 0.0  ;;  %v399_v43 = vmax.f32 %v381_v35, 0.0 }
  0xf8   : > { %v394_v44 = vmax.f32 %v356_v38, 0.0  ;;  %v398_v45 = vmax.f32 %v376_v39, 0.0  ;;  %v544_v46 = vpop.f32.mrb[2].mxu0  ;;  %v550_v47 = vpop.f32.mrb[2].mxu1 }
  0xf9   : > { %404 = vst.msk [vmem:[%s201_s5 + $0x8] sm:$0xff] %vm402_vm1, %v395_v42  ;;  %408 = vst.msk [vmem:[%s201_s5 + $0x28] sm:$0xff] %vm402_vm1, %v399_v43  ;;  %v371_v48 = vadd.f32 %v544_v46, %v242_v28  ;;  %v391_v49 = vadd.f32 %v550_v47, %v262_v40  ;;  %v365_v50 = vpop.f32.mrb[3].mxu0  ;;  %v385_v51 = vpop.f32.mrb[3].mxu1 }
  0xfa   : > { %403 = vst.msk [vmem:[%s201_s5] sm:$0xff] %vm402_vm1, %v394_v44  ;;  %407 = vst.msk [vmem:[%s201_s5 + $0x20] sm:$0xff] %vm402_vm1, %v398_v45  ;;  %v366_v52 = vadd.f32 %v365_v50, %v237_v26  ;;  %v386_v53 = vadd.f32 %v385_v51, %v257_v41 }
  0xfb   : > { %v397_v54 = vmax.f32 %v371_v48, 0.0  ;;  %v401_v55 = vmax.f32 %v391_v49, 0.0 }
  0xfc   : > { %v396_v56 = vmax.f32 %v366_v52, 0.0  ;;  %v400_v57 = vmax.f32 %v386_v53, 0.0 }
  0xfd   : > { %406 = vst.msk [vmem:[%s201_s5 + $0x18] sm:$0xff] %vm402_vm1, %v397_v54  ;;  %410 = vst.msk [vmem:[%s201_s5 + $0x38] sm:$0xff] %vm402_vm1, %v401_v55 }
  0xfe   : > { %405 = vst.msk [vmem:[%s201_s5 + $0x10] sm:$0xff] %vm402_vm1, %v396_v56  ;;  %409 = vst.msk [vmem:[%s201_s5 + $0x30] sm:$0xff] %vm402_vm1, %v400_v57 }
  0xff PF: > { %s13_s14 = sadd.s32 1, %s619_s14   ;;  %s747_s12 = smov %s615_s13 }
 0x100   : > { %p10_p5 = scmp.ge.s32.totalorder %s13_s14, 4   ;;  %s748_s13 = smov %s750_s15 }
 0x102   :  { %12 = sbr.rel (!%p10_p5) target bundleno = 2 (0x2), region = 62 }

</bundles_post_ra>
